<compile_context>
chip_gen: v7x
topology: tpu7x:2x2x1
jax: 0.10.0
libtpu: 0.0.40
codegen_flags: <defaults>
</compile_context>

<pallas_src>
import functools

import jax
import jax.numpy as jnp
from jax.experimental import pallas as pl
from jax.experimental.pallas import tpu as pltpu


def _distance_kernel(x_ref, y_ref, o_ref, *, ts, s_rows, bps, has_tail):
    """One grid step: accumulate sum((x-y)^2) for a (ts,128) slab.

    x_ref, y_ref : (1, ts, 128) tiles in the *native* input dtype
    o_ref        : (1, 1, 8, 128) f32 partial accumulator, resident across the
                   reduction (s) grid axis for the current (batch, split).
    """
    c = pl.program_id(1)          # S-split index
    s = pl.program_id(2)          # reduction block index within the split

    @pl.when(s == 0)
    def _():
        o_ref[...] = jnp.zeros_like(o_ref)

    gblk = c * bps + s            # logical (unclamped) global s-block index
    row0 = gblk * ts              # first logical 128-lane row of this block

    CH = 128                      # rows per fold chunk (16 f32 vregs/operand)
    n_main = ts // CH
    rem = ts - n_main * CH        # leftover rows (< 128, static)

    def chunk_sum(start, nrows, acc, masked):
        # Upcast per chunk: HBM traffic stays native width, math is f32.
        xv = x_ref[0, pl.ds(start, nrows), :].astype(jnp.float32)
        yv = y_ref[0, pl.ds(start, nrows), :].astype(jnp.float32)
        d = xv - yv
        sq = d * d
        if masked:
            # Zero rows beyond the true row count (tail / duplicate blocks).
            r = jax.lax.broadcasted_iota(jnp.int32, (nrows, 128), 0) + (row0 + start)
            sq = jnp.where(r < s_rows, sq, 0.0)
        if nrows % 8 == 0:
            # vreg-aligned fold: pure VPU adds into the (8, 128) partial.
            return acc + sq.reshape(nrows // 8, 8, 128).sum(axis=0)
        # Tiny odd remainder (single-block case only): one cross-sublane
        # reduce, deposited into sublane 0 of the partial.
        rowsum = jnp.broadcast_to(sq.sum(axis=0, keepdims=True), (8, 128))
        first = jax.lax.broadcasted_iota(jnp.int32, (8, 128), 0) == 0
        return acc + jnp.where(first, rowsum, 0.0)

    def fold(masked):
        acc = jnp.zeros((8, 128), jnp.float32)
        if n_main > 0:
            def body(i, a):
                start = pl.multiple_of(i * CH, CH)
                return chunk_sum(start, CH, a, masked)
            acc = jax.lax.fori_loop(0, n_main, body, acc,
                                    unroll=min(2, n_main))
        if rem:
            acc = chunk_sum(n_main * CH, rem, acc, masked)
        o_ref[...] += acc[None, None, :, :]

    if has_tail:
        needs_mask = (row0 + ts) > s_rows   # only tail / duplicate blocks
        @pl.when(jnp.logical_not(needs_mask))
        def _():
            fold(False)

        @pl.when(needs_mask)
        def _():
            fold(True)
    else:
        fold(False)


def distance_forward(x, y, *, target_block_bytes=2 * 1024 * 1024,
                     block_rows=None):
    """d(x, y) = 0.5 * ||x - y||^2 per batch element.  Returns (B,) float32."""
    assert x.shape == y.shape, "x and y must have the same shape"
    B = x.shape[0]

    xf = x.reshape(B, -1)
    yf = y.reshape(B, -1)
    N = xf.shape[1]

    S = N // 128                  # full 128-lane groups per batch row
    rem_lanes = N - S * 128

    # Ragged tail (< 128 elements per row): tiny jnp reduction instead of a
    # wrapper-side jnp.pad of BOTH operands.
    if rem_lanes:
        xt = xf[:, S * 128:].astype(jnp.float32)
        yt = yf[:, S * 128:].astype(jnp.float32)
        tail = jnp.sum((xt - yt) ** 2, axis=-1)
    else:
        tail = jnp.zeros((B,), jnp.float32)

    if S == 0:                    # everything fit in the tail
        return 0.5 * tail

    # Bulk: lane-dense (B, S, 128) view.  Free when N % 128 == 0; for ragged N
    # the prefix slice may materialize a bulk copy (still cheaper than padding
    # and re-reading both operands).
    x3 = xf[:, :S * 128].reshape(B, S, 128)
    y3 = yf[:, :S * 128].reshape(B, S, 128)

    itemsize = jnp.dtype(x.dtype).itemsize
    if block_rows is None:
        # ~2 MiB per input per grid step in the native dtype: 4096 rows f32,
        # 8192 rows bf16.  (Also inside the 1-2 MiB sweet spot for v5e.)
        block_rows = max(128, (target_block_bytes // (128 * itemsize)) // 128 * 128)
    assert block_rows % 8 == 0

    if S <= block_rows:
        ts = S                    # single reduction block (== full dim)
        n_s_blocks = 1
    else:
        ts = block_rows
        n_s_blocks = pl.cdiv(S, ts)

    # Second "parallel" axis: split the reduction in two when the batch axis
    # alone would strand one v7x TensorCore (B odd / B == 1).  Harmless on
    # single-TC v5e/v6e.
    n_split = 2 if (n_s_blocks >= 2 and B % 2 == 1) else 1
    bps = pl.cdiv(n_s_blocks, n_split)          # s-blocks per split

    # Does any block overhang the true row count (partial last block, or a
    # duplicated block created by an uneven split)?
    has_tail = (S % ts != 0) or (bps * n_split > n_s_blocks)

    def in_map(b, c, s):
        blk = c * bps + s
        if bps * n_split > n_s_blocks:           # static: clamp split overhang
            blk = jnp.minimum(blk, n_s_blocks - 1)
        return (b, blk, 0)

    kernel = functools.partial(_distance_kernel, ts=ts, s_rows=S, bps=bps,
                               has_tail=has_tail)

    block_bytes = ts * 128 * itemsize
    # 2 inputs x 2 pipeline buffers x block_bytes + slack.
    vmem_limit = int(max(32 * 1024 * 1024, 4 * block_bytes + 8 * 1024 * 1024))

    partials = pl.pallas_call(
        kernel,
        out_shape=jax.ShapeDtypeStruct((B, n_split, 8, 128), jnp.float32),
        grid_spec=pltpu.PrefetchScalarGridSpec(
            num_scalar_prefetch=0,
            grid=(B, n_split, bps),
            in_specs=[
                pl.BlockSpec((1, ts, 128), in_map),
                pl.BlockSpec((1, ts, 128), in_map),
            ],
            out_specs=pl.BlockSpec((1, 1, 8, 128), lambda b, c, s: (b, c, 0, 0)),
        ),
        compiler_params=pltpu.CompilerParams(
            dimension_semantics=("parallel", "parallel", "arbitrary"),
            vmem_limit_bytes=vmem_limit,
        ),
    )(x3, y3)

    # Tiny final reduction (n_split * 1024 f32 per batch row) + the 0.5 factor.
    bulk = partials.reshape(B, -1).sum(axis=-1)
    return 0.5 * (bulk + tail)


class Distance:
    """JAX/Pallas analogue of the PyTorch `Distance` potential.

    With the default d=None the quadratic distance 0.5*||x - y||^2 is used.
    """

    def __init__(self, d=None):
        self._d = d if d is not None else distance_forward

    def __call__(self, x, y, *args, **kwargs):
        return self._d(x, y, *args, **kwargs)


if __name__ == "__main__":
    key = jax.random.PRNGKey(0)
    k = jax.random.split(key, 8)

    dist = Distance()

    # Test 1: canonical small image batch, f32, N % 128 == 0 (free lane-dense
    # view), single reduction block.
    B, C, H, W = 2, 4, 16, 16
    x = jax.random.normal(k[0], (B, C, H, W), dtype=jnp.float32)
    y = jax.random.normal(k[1], (B, C, H, W), dtype=jnp.float32)
    d = jax.block_until_ready(dist(x, y))
    ref = 0.5 * jnp.sum((x - y).reshape(B, -1) ** 2, axis=-1)
    assert d.shape == (B,)
    assert jnp.allclose(d, ref, rtol=1e-5, atol=1e-5), (d, ref)

    # Test 2: bf16 native-dtype streaming, ragged N (jnp tail path), odd row
    # count (in-kernel cross-sublane remainder fold).
    B2 = 2
    a = jax.random.normal(k[2], (B2, 3, 33, 17), dtype=jnp.bfloat16)
    b = jax.random.normal(k[3], (B2, 3, 33, 17), dtype=jnp.bfloat16)
    d2 = jax.block_until_ready(dist(a, b))
    ref2 = 0.5 * jnp.sum(
        (a.astype(jnp.float32) - b.astype(jnp.float32)).reshape(B2, -1) ** 2,
        axis=-1)
    assert jnp.allclose(d2, ref2, rtol=1e-4, atol=1e-4), (d2, ref2)

    # Test 3: B odd -> S-split parallel axis, multiple reduction blocks,
    # masked tail block, ragged lanes (block_rows=8 forces multi-block).
    x3 = jax.random.normal(k[4], (1, 3, 20, 20), dtype=jnp.float32)
    y3 = jax.random.normal(k[5], (1, 3, 20, 20), dtype=jnp.float32)
    d3 = jax.block_until_ready(distance_forward(x3, y3, block_rows=8))
    ref3 = 0.5 * jnp.sum((x3 - y3).reshape(1, -1) ** 2, axis=-1)
    assert jnp.allclose(d3, ref3, rtol=1e-4, atol=1e-4), (d3, ref3)

    # Test 4: exercises the in-kernel chunked fori_loop fold, the split-axis
    # clamped duplicate block and the masked tail block together.
    x4 = jax.random.normal(k[6], (1, 2, 160, 128), dtype=jnp.float32)  # S=320
    y4 = jax.random.normal(k[7], (1, 2, 160, 128), dtype=jnp.float32)
    d4 = jax.block_until_ready(distance_forward(x4, y4, block_rows=128))
    ref4 = 0.5 * jnp.sum((x4 - y4).reshape(1, -1) ** 2, axis=-1)
    assert jnp.allclose(d4, ref4, rtol=1e-4, atol=1e-4), (d4, ref4)

    print("KERNEL_OK")
</pallas_src>

<mosaic_0001>
module attributes {stable_mosaic.version = 11 : i64} {
  func.func @_distance_kernel(%arg0: i32, %arg1: i32, %arg2: i32, %arg3: memref<1x8x128xf32, #tpu.memory_space<vmem>>, %arg4: memref<1x8x128xf32, #tpu.memory_space<vmem>>, %arg5: memref<1x1x8x128xf32, #tpu.memory_space<vmem>>) attributes {dimension_semantics = [#tpu.dimension_semantics<parallel>, #tpu.dimension_semantics<parallel>, #tpu.dimension_semantics<arbitrary>], iteration_bounds = array<i64: 2, 1, 1>, scalar_prefetch = 0 : i64, scratch_operands = 0 : i64, tpu.core_type = #tpu.core_type<tc>, window_params = [{transform_indices = @transform_0, window_bounds = array<i64: 1, 8, 128>}, {transform_indices = @transform_1, window_bounds = array<i64: 1, 8, 128>}, {transform_indices = @transform_2, window_bounds = array<i64: 1, 1, 8, 128>}]} {
    %c0_i32 = arith.constant 0 : i32
    %0 = arith.cmpi eq, %arg2, %c0_i32 : i32
    %1 = arith.extui %0 : i1 to i32
    %c0_i32_0 = arith.constant 0 : i32
    %2 = arith.cmpi ne, %1, %c0_i32_0 : i32
    scf.if %2 {
      %cst_15 = arith.constant 0.000000e+00 : f32
      %17 = vector.broadcast %cst_15 : f32 to vector<1x1x8x128xf32>
      %c0_16 = arith.constant 0 : index
      %c0_17 = arith.constant 0 : index
      %c0_18 = arith.constant 0 : index
      %c0_19 = arith.constant 0 : index
      %18 = vector.load %arg5[%c0_16, %c0_17, %c0_18, %c0_19] : memref<1x1x8x128xf32, #tpu.memory_space<vmem>>, vector<1x1x8x128xf32>
      tpu.vector_store %arg5[%c0_16, %c0_17, %c0_18, %c0_19], %17 {strides = array<i32>} : memref<1x1x8x128xf32, #tpu.memory_space<vmem>>, vector<1x1x8x128xf32>,
    } else {
    }
    %cst = arith.constant 0.000000e+00 : f32
    %3 = vector.broadcast %cst : f32 to vector<8x128xf32>
    %c0 = arith.constant 0 : index
    %c0_1 = arith.constant 0 : index
    %c0_2 = arith.constant 0 : index
    %4 = vector.load %arg3[%c0, %c0_1, %c0_2] : memref<1x8x128xf32, #tpu.memory_space<vmem>>, vector<1x8x128xf32>
    %5 = vector.shape_cast %4 : vector<1x8x128xf32> to vector<8x128xf32>
    %c0_3 = arith.constant 0 : index
    %c0_4 = arith.constant 0 : index
    %c0_5 = arith.constant 0 : index
    %6 = vector.load %arg4[%c0_3, %c0_4, %c0_5] : memref<1x8x128xf32, #tpu.memory_space<vmem>>, vector<1x8x128xf32>
    %7 = vector.shape_cast %6 : vector<1x8x128xf32> to vector<8x128xf32>
    %8 = arith.subf %5, %7 : vector<8x128xf32>
    %9 = arith.mulf %8, %8 : vector<8x128xf32>
    %10 = vector.shape_cast %9 : vector<8x128xf32> to vector<1x8x128xf32>
    %cst_6 = arith.constant dense<0.000000e+00> : vector<8x128xf32>
    %11 = vector.multi_reduction <add>, %10, %cst_6 [0] : vector<1x8x128xf32> to vector<8x128xf32>
    %12 = arith.addf %3, %11 : vector<8x128xf32>
    %c0_7 = arith.constant 0 : index
    %c0_8 = arith.constant 0 : index
    %c0_9 = arith.constant 0 : index
    %c0_10 = arith.constant 0 : index
    %13 = vector.load %arg5[%c0_7, %c0_8, %c0_9, %c0_10] : memref<1x1x8x128xf32, #tpu.memory_space<vmem>>, vector<1x1x8x128xf32>
    %14 = vector.shape_cast %12 : vector<8x128xf32> to vector<1x1x8x128xf32>
    %15 = arith.addf %13, %14 : vector<1x1x8x128xf32>
    %c0_11 = arith.constant 0 : index
    %c0_12 = arith.constant 0 : index
    %c0_13 = arith.constant 0 : index
    %c0_14 = arith.constant 0 : index
    %16 = vector.load %arg5[%c0_11, %c0_12, %c0_13, %c0_14] : memref<1x1x8x128xf32, #tpu.memory_space<vmem>>, vector<1x1x8x128xf32>
    tpu.vector_store %arg5[%c0_11, %c0_12, %c0_13, %c0_14], %15 {strides = array<i32>} : memref<1x1x8x128xf32, #tpu.memory_space<vmem>>, vector<1x1x8x128xf32>,
    return
  }
  func.func @transform_0(%arg0: i32, %arg1: i32, %arg2: i32) -> (i32, i32, i32) {
    %c1_i32 = arith.constant 1 : i32
    %0 = arith.muli %arg1, %c1_i32 : i32
    %1 = arith.addi %0, %arg2 : i32
    %c0_i32 = arith.constant 0 : i32
    %c0_i32_0 = arith.constant 0 : i32
    return %arg0, %1, %c0_i32 : i32, i32, i32
  }
  func.func @transform_1(%arg0: i32, %arg1: i32, %arg2: i32) -> (i32, i32, i32) {
    %c1_i32 = arith.constant 1 : i32
    %0 = arith.muli %arg1, %c1_i32 : i32
    %1 = arith.addi %0, %arg2 : i32
    %c0_i32 = arith.constant 0 : i32
    %c0_i32_0 = arith.constant 0 : i32
    return %arg0, %1, %c0_i32 : i32, i32, i32
  }
  func.func @transform_2(%arg0: i32, %arg1: i32, %arg2: i32) -> (i32, i32, i32, i32) {
    %c0_i32 = arith.constant 0 : i32
    %c0_i32_0 = arith.constant 0 : i32
    %c0_i32_1 = arith.constant 0 : i32
    return %arg0, %arg1, %c0_i32, %c0_i32_0 : i32, i32, i32, i32
  }
}

</mosaic_0001>

<bundles_post_ra>
// kernel: tpu_custom_call.1
= control target key start
LH: loop header
LB: loop body
LE: loop exit
PB: predicated region body
PF: predicated region fallthrough
CT: control target
= control target key end

     0   :  { %7 = vsyncpa [#allocation3], 0  ;;  %s839_s0 = inlined_call_operand.hbm [shape: f32[2,8,128], index: 0, kind: input, shape index: {}]   ;;  %s840_s1 = inlined_call_operand.hbm [shape: f32[2,8,128], index: 1, kind: input, shape index: {}]   ;;  %s841_s2 = inlined_call_operand.hbm [shape: f32[2,1,8,128], index: 2, kind: output, shape index: {}]  }
   0x1   :  { %9 = vsyncpa [#allocation3 + $0x1], 0 }
   0x2   :  { %10 = vsyncpa [#allocation6], 0 }
   0x3   :  { %12 = vsyncpa [#allocation6 + $0x1], 0 }
   0x4   :  { %13 = vsyncpa [#allocation4], 0 }
   0x5   :  { %15 = vsyncpa [#allocation4 + $0x1], 0  ;;  %s619_s9 = smov 0   ;;  %s621_s10 = smov 0  }
   0x6   :  { %s623_s11 = smov 0   ;;  %s625_s12 = smov 0  }
   0x7   :  { %s627_s13 = smov 0   ;;  %s629_s14 = smov 0  }
   0x8 LB: > { %s369_s15 = sadd.s32 4294967295, %s599_s14   ;;  %s370_s16 = sadd.s32 4294967294, %s599_s14   ;;  %s599_s14 = sphi %s629_s14, %s21_s14   ;;  %s595_s13 = sphi %s627_s13, %s861_s13   ;;  %s591_s12 = sphi %s625_s12, %s860_s12   ;;  %s587_s11 = sphi %s623_s11, %s859_s11   ;;  %s583_s10 = sphi %s621_s10, %s858_s10   ;;  %s579_s9 = sphi %s619_s9, %s857_s9  }
   0x9   : > { %s40_s17 = sadd.s32 1, %s595_s13  ;;  %s51_s18 = sadd.s32 1, %s587_s11 }
   0xa   : > { %p42_p0 = scmp.ge.s32.totalorder %s40_s17, 2  ;;  %p58_p1 = scmp.ne.s32.totalorder %s587_s11, %s583_s10 }
   0xb   : > { %p59_p2 = scmp.eq.s32.totalorder %s599_s14, 0  ;;  %p64_p3 = scmp.ne.s32.totalorder %s583_s10, %s579_s9 }
   0xc   : > { %s863_s17 = smov (%p42_p0, %s40_s17), 0  ;;  %p65_p5 = scmp.eq.s32.totalorder %s369_s15, 0 }
   0xd   : > { %p660_p4 = por %p59_p2, %p58_p1  ;;  %s46_s20 = ssub.s32 %s595_s13, %s863_s17 }
   0xe   : > { %p120_p6 = scmp.eq.s32.totalorder %s369_s15, 1  ;;  %p49_p7 = scmp.eq.s32.totalorder %s46_s20, 0 }
   0xf   : > { %p666_p8 = por %p65_p5, %p64_p3  ;;  %p126_p10 = scmp.eq.s32.totalorder %s370_s16, 1 }
  0x10   : > { %p670_p9 = por %p120_p6, %p58_p1  ;;  %p402_p13 = scmp.lt.s32.totalorder %s599_s14, 2 }
  0x11   : > { %s845_s21 = scalar_select %p666_p8, 1, 0 }
  0x12   : > { %s846_s22 = scalar_select %p670_p9, 1, 0 }
  0x13   : > { %s675_s23 = scalar_select %p49_p7, %s587_s11, %s51_s18  }
  0x14   : > { %p677_p11 = por %p126_p10, %p64_p3  ;;  %s684_s25 = sand.u32 1, %s587_s11  }
  0x15   : > { %s373_s26 = sshll.u32 %s684_s25, 3  ;;  %s374_s27 = sshll.u32 %s595_s13, 7 }
  0x16   : > { %s847_s24 = scalar_select %p677_p11, 1, 0 }
  0x17   : > { %s693_s30 = scalar_lea.hbm %s839_s0, %s374_s27  ;;  %s150_s3 = scalar_lea.vmem [#allocation2], %s373_s26 }
  0x18   : > { %s159_s4 = sshll.u32 %s150_s3, 4  ;;  %p701_p0 = pnand %p402_p13, %p660_p4  ;;  %s697_s4 = int_to_ptr.vmem [resolvable:$true] %s159_s4 }
  0x19   : > { %s147_s6 = scalar_lea.sflag [#allocation3], %s684_s25  ;;  %s453_s7 = scalar_lea.hbm %s693_s30, 128 }
  0x1a   : > { %p454_p3 = scmp.ne.s32.totalorder %s693_s30, %s453_s7  ;;  %p455_p5 = pneg %p701_p0 }
  0x1b   : > { %s458_s16 = scalar_lea.hbm %s839_s0, 256  ;;  %p459_p4 = scmp.lt.u32.totalorder %s693_s30, %s839_s0 }
  0x1c   : > { %p456_p6 = pnand %p455_p5, %p454_p3  ;;  %p460_p10 = scmp.lt.u32.totalorder %s458_s16, %s453_s7 }
  0x1d   : > { %p462_p12 = scmp.lt.u32.totalorder %s453_s7, %s693_s30 }
  0x1e   : > { %p457_p7 = pneg %p456_p6  ;;  %p461_p13 = por %p460_p10, %p459_p4 }
  0x20   : > { %p463_p1 = por %p462_p12, %p461_p13 }
  0x22   : > { %p464_p2 = pnand %p463_p1, %p457_p7 }
  0x24   : > { %467 = shalt.err (!%p464_p2)
}
  0x25   : > { %s468_s20 = scalar_lea.vmem %s697_s4, 128  ;;  %s601_s28 = smov [#allocation2]  }
  0x26   : > { %p469_p3 = scmp.ne.s32.totalorder %s697_s4, %s468_s20  ;;  %s473_s29 = sshll.u32 %s601_s28, 4  ;;  %s474_s29 = int_to_ptr.vmem [resolvable:$false] %s473_s29 }
  0x27   : > { %s475_s3 = scalar_lea.vmem %s474_s29, 256  ;;  %p476_p9 = scmp.lt.s32.totalorder %s697_s4, %s474_s29 }
  0x28   : > { %p471_p6 = pnand %p469_p3, %p455_p5  ;;  %p477_p4 = scmp.lt.s32.totalorder %s475_s3, %s468_s20 }
  0x2a   : > { %p472_p11 = pneg %p471_p6  ;;  %p478_p10 = por %p477_p4, %p476_p9 }
  0x2c   : > { %p479_p12 = pnand %p478_p10, %p472_p11 }
  0x2e   : > { %482 = shalt.err (!%p479_p12)
}
  0x2f   : > { %394 = dma.hbm_to_vmem [thread:$0]  (!%p701_p0), %s693_s30, 128, %s697_s4, %s147_s6  }
  0x30   : > { %p849_p1 = scmp.lt.s32.totalorder %s599_s14, 3  ;;  %p850_p2 = scmp.ge.s32.totalorder %s599_s14, 1 }
  0x31   : > { %s746_s16 = scalar_lea.hbm %s840_s1, %s374_s27  ;;  %s170_s18 = scalar_lea.vmem [#allocation5], %s373_s26 }
  0x32   : > { %p737_p7 = pnand %p850_p2, %p849_p1  ;;  %s179_s19 = sshll.u32 %s170_s18, 4  ;;  %s180_s19 = int_to_ptr.vmem [resolvable:$true] %s179_s19 }
  0x33   : > { %s167_s30 = scalar_lea.sflag [#allocation6], %s684_s25  ;;  %s483_s4 = scalar_lea.hbm %s746_s16, 128 }
  0x34   : > { %s851_s7 = scalar_select %p737_p7, 1, 0 }
  0x35   : > { %p484_p9 = scmp.ne.s32.totalorder %s746_s16, %s483_s4  ;;  %s488_s27 = scalar_lea.hbm %s840_s1, 256 }
  0x36   : > { %p489_p3 = scmp.lt.u32.totalorder %s746_s16, %s840_s1  ;;  %p490_p6 = scmp.lt.u32.totalorder %s488_s27, %s483_s4 }
  0x37   : > { %p486_p11 = pnand %p484_p9, %p455_p5  ;;  %p492_p10 = scmp.lt.u32.totalorder %s483_s4, %s746_s16 }
  0x38   : > { %p491_p4 = por %p490_p6, %p489_p3 }
  0x39   : > { %p487_p13 = pneg %p486_p11 }
  0x3a   : > { %p493_p12 = por %p492_p10, %p491_p4 }
  0x3c   : > { %p494_p1 = pnand %p493_p12, %p487_p13 }
  0x3e   : > { %497 = shalt.err (!%p494_p1)
}
  0x3f   : > { %s498_s25 = scalar_lea.vmem %s180_s19, 128  ;;  %s602_s26 = smov [#allocation5]  }
  0x40   : > { %p499_p2 = scmp.ne.s32.totalorder %s180_s19, %s498_s25  ;;  %s503_s3 = sshll.u32 %s602_s26, 4  ;;  %s504_s3 = int_to_ptr.vmem [resolvable:$false] %s503_s3 }
  0x41   : > { %s505_s8 = scalar_lea.vmem %s504_s3, 256  ;;  %p506_p8 = scmp.lt.s32.totalorder %s180_s19, %s504_s3 }
  0x42   : > { %p501_p9 = pnand %p499_p2, %p455_p5  ;;  %p507_p7 = scmp.lt.s32.totalorder %s505_s8, %s498_s25 }
  0x44   : > { %p502_p11 = pneg %p501_p9  ;;  %p508_p3 = por %p507_p7, %p506_p8 }
  0x46   : > { %p509_p6 = pnand %p508_p3, %p502_p11 }
  0x48   : > { %512 = shalt.err (!%p509_p6)
}
  0x49   : > { %397 = dma.hbm_to_vmem [thread:$0]  (!%p701_p0), %s746_s16, 128, %s180_s19, %s167_s30  }
  0x4a   : > { %p852_p13 = scmp.ne.s32.totalorder %s851_s7, 0 }
  0x4b   : > { %s773_s15 = sand.u32 (!%p852_p13), 1, %s583_s10   ;;  %p853_p5 = scmp.ne.s32.totalorder (!%p852_p13), %s845_s21, 0 }
  0x4c   : > { %188 = sbr.rel (%p852_p13) target bundleno = 112 (0x70), region = 28  ;;  %s378_s18 = sshll.u32 (!%p852_p13), %s773_s15, 3 }
  0x4d   : > { %s191_s4 = scalar_lea.sflag (!%p852_p13), [#allocation3], %s773_s15  ;;  %s194_s6 = scalar_lea.vmem (!%p852_p13), [#allocation2], %s378_s18 }
  0x53   : > { %566 = dma.done.wait (%p853_p5), %s191_s4, 128  }
  0x54   : > { %568 = vsyncadd (%p853_p5), %s191_s4, 4294967168  ;;  %s200_s5 = scalar_lea.sflag [#allocation6], %s773_s15  ;;  %s203_s16 = scalar_lea.vmem [#allocation5], %s378_s18 }
  0x55   : > { %570 = dma.done.wait (%p853_p5), %s200_s5, 128  }
  0x56   : > { %572 = vsyncadd (%p853_p5), %s200_s5, 4294967168  ;;  %v236_v0 = vld [vmem:[%s194_s6] sm:$0xff]  ;;  %v237_v1 = vld [vmem:[%s203_s16] sm:$0xff]  ;;  %s382_s7 = sshll.u32 %s591_s12, 7  ;;  %s228_s19 = scalar_lea.vmem [#allocation7], %s378_s18 }
  0x57   : > { %v238_v2 = vsub.f32 %v236_v0, %v237_v1  ;;  %s260_s30 = sshll.u32 %s228_s19, 4  ;;  %s790_s28 = scalar_lea.hbm %s841_s2, %s382_s7  ;;  %s792_s30 = int_to_ptr.vmem [resolvable:$true] %s260_s30 }
  0x58   : > { %s246_s21 = scalar_lea.sflag [#allocation4], %s773_s15  ;;  %s513_s29 = scalar_lea.vmem %s792_s30, 128 }
  0x59   : > { %v239_v3 = vmul.f32 %v238_v2, %v238_v2  ;;  %p514_p8 = scmp.ne.s32.totalorder %s792_s30, %s513_s29  ;;  %p854_p0 = scmp.ne.s32.totalorder %s846_s22, 0 }
  0x5a   : > { %s603_s12 = smov [#allocation7]  }
  0x5b   : > { %244 = vst [vmem:[%s228_s19] sm:$0xff] %v239_v3  ;;  %p515_p7 = pnand %p514_p8, %p854_p0  ;;  %s517_s25 = sshll.u32 %s603_s12, 4  ;;  %s518_s25 = int_to_ptr.vmem [resolvable:$false] %s517_s25 }
  0x5c   : > { %s519_s26 = scalar_lea.vmem %s518_s25, 256  ;;  %p520_p10 = scmp.lt.s32.totalorder %s792_s30, %s518_s25 }
  0x5d   : > { %p516_p4 = pneg %p515_p7  ;;  %p521_p12 = scmp.lt.s32.totalorder %s519_s26, %s513_s29 }
  0x5f   : > { %p522_p1 = por %p521_p12, %p520_p10 }
  0x61   : > { %p523_p2 = pnand %p522_p1, %p516_p4 }
  0x63   : > { %526 = shalt.err (!%p523_p2)
}
  0x64   : > { %s527_s3 = scalar_lea.hbm %s790_s28, 128  ;;  %s531_s18 = scalar_lea.hbm %s841_s2, 256 }
  0x65   : > { %p528_p9 = scmp.ne.s32.totalorder %s790_s28, %s527_s3  ;;  %p532_p6 = scmp.lt.u32.totalorder %s790_s28, %s841_s2 }
  0x66   : > { %p533_p13 = scmp.lt.u32.totalorder %s531_s18, %s527_s3  ;;  %p535_p8 = scmp.lt.u32.totalorder %s527_s3, %s790_s28 }
  0x67   : > { %p529_p11 = pnand %p528_p9, %p854_p0 }
  0x68   : > { %p534_p5 = por %p533_p13, %p532_p6 }
  0x69   : > { %p530_p3 = pneg %p529_p11 }
  0x6a   : > { %p536_p7 = por %p535_p8, %p534_p5 }
  0x6c   : > { %p537_p4 = pnand %p536_p7, %p530_p3 }
  0x6e   : > { %540 = shalt.err (!%p537_p4)
}
  0x6f   : > { %389 = dma.vmem_to_hbm [thread:$0]  (%p854_p0), %s792_s30, 128, %s790_s28, %s246_s21  }
  0x70 PF: > { %s272_s5 = sand.u32 1, %s579_s9   ;;  %p855_p10 = scmp.ne.s32.totalorder %s847_s24, 0 }
  0x71   : > { %p856_p12 = scmp.ge.s32.totalorder %s599_s14, 2  ;;  %s273_s16 = scalar_lea.sflag [#allocation4], %s272_s5 }
  0x73   : > { %p399_p1 = pnand %p856_p12, %p855_p10 }
  0x75   : > { %574 = dma.done.wait (!%p399_p1), %s273_s16, 128  }
  0x76   : > { %576 = vsyncadd (!%p399_p1), %s273_s16, 4294967168  ;;  %s21_s14 = sadd.s32 1, %s599_s14   ;;  %s857_s9 = smov %s583_s10 }
  0x77   : > { %p18_p2 = scmp.ge.s32.totalorder %s21_s14, 4   ;;  %s858_s10 = smov %s587_s11 }
  0x78   : > { %s859_s11 = smov %s675_s23  ;;  %s860_s12 = smov %s595_s13 }
  0x79   : > { %s861_s13 = smov %s863_s17  ;;  %20 = sbr.rel (!%p18_p2) target bundleno = 8 (0x8), region = 90 }
  0x80   :  { %278 = vsyncpa [#allocation3], 1 }
  0x81   :  { %280 = vsyncpa [#allocation3 + $0x1], 1 }
  0x82   :  { %281 = vsyncpa [#allocation6], 1 }
  0x83   :  { %283 = vsyncpa [#allocation6 + $0x1], 1 }
  0x84   :  { %284 = vsyncpa [#allocation4], 1 }
  0x85   :  { %286 = vsyncpa [#allocation4 + $0x1], 1 }

</bundles_post_ra>
